<compile_context>
chip_gen: v7x
topology: tpu7x:2x2x1
jax: 0.10.0
libtpu: 0.0.40
codegen_flags: <defaults>
</compile_context>

<pallas_src>
import jax
import jax.numpy as jnp
from jax import lax
from jax.experimental import pallas as pl
from jax.experimental.pallas import tpu as pltpu


def rnn_recurrence_kernel(x_ref, h0_ref, w_ref, b_ref, r_ref, h_out_ref):
    """Single-invocation kernel: full tanh-RNN recurrence over the sequence.

    x_ref : (S, B, in_d)        whole input sequence, resident in VMEM
    h0_ref: (1, B, H)
    w_ref : (in_d + H, H)       fused [W_ih^T ; W_hh^T]
    b_ref : (1, H)              b_ih + b_hh
    r_ref : (S, B, H)  out      all hidden states (f32)
    h_out_ref: (1, B, H) out    final hidden state
    """
    S = x_ref.shape[0]

    def step(t, h_prev):
        x_t = x_ref[t].astype(jnp.float32)                 # (B, in_d)
        xh = jnp.concatenate([x_t, h_prev], axis=-1)       # (B, in_d + H)
        pre = jnp.dot(xh, w_ref[...],
                      preferred_element_type=jnp.float32) + b_ref[...]
        h_new = jnp.tanh(pre)                              # (B, H), f32
        r_ref[t] = h_new.astype(r_ref.dtype)
        return h_new

    h_last = lax.fori_loop(0, S, step, h0_ref[0].astype(jnp.float32),
                           unroll=True)
    h_out_ref[0] = h_last.astype(h_out_ref.dtype)


def linear_kernel(x_ref, w_ref, b_ref, y_ref):
    """y = x @ w + b as one batched matmul (x: (S*B, H), w: (H, out_d))."""
    y_ref[...] = (jnp.dot(x_ref[...], w_ref[...],
                          preferred_element_type=jnp.float32)
                  + b_ref[...]).astype(y_ref.dtype)


def rnn_model_forward(x, h0, w_ih, w_hh, b_ih, b_hh, w_fc, b_fc):
    """x: (S, B, in_d), h0: (1, B, H). Returns (y: (S, B, out_d), h: (1, B, H))."""
    S, B, in_d = x.shape
    H = w_ih.shape[0]
    out_d = w_fc.shape[0]

    # Host-side weight prep: fused recurrence weight + transposed fc weight.
    w_rnn = jnp.concatenate([w_ih.T, w_hh.T], axis=0)      # (in_d + H, H)
    b_rnn = (b_ih + b_hh).reshape(1, H)                    # (1, H)
    wfc_t = w_fc.T                                         # (H, out_d)
    bfc2 = b_fc.reshape(1, out_d)                          # (1, out_d)

    vmem = lambda: pl.BlockSpec(memory_space=pltpu.MemorySpace.VMEM)

    # --- recurrence: one kernel invocation, in-kernel unrolled time loop ---
    r, h = pl.pallas_call(
        rnn_recurrence_kernel,
        out_shape=(
            jax.ShapeDtypeStruct((S, B, H), jnp.float32),   # all hidden states
            jax.ShapeDtypeStruct((1, B, H), x.dtype),       # final hidden state
        ),
        in_specs=[vmem(), vmem(), vmem(), vmem()],
        out_specs=(vmem(), vmem()),
    )(x, h0, w_rnn, b_rnn)

    # --- fc: single batched (S*B, H) @ (H, out_d) matmul ---
    # (S, B, H) -> (S*B, H) is a free row-major reshape in XLA.
    y2d = pl.pallas_call(
        linear_kernel,
        out_shape=jax.ShapeDtypeStruct((S * B, out_d), x.dtype),
        in_specs=[vmem(), vmem(), vmem()],
        out_specs=vmem(),
    )(r.reshape(S * B, H), wfc_t, bfc2)

    return y2d.reshape(S, B, out_d), h


def rnn_model_reference(x, h0, w_ih, w_hh, b_ih, b_hh, w_fc, b_fc):
    """Pure-JAX reference mirroring torch.nn.RNN(tanh) + nn.Linear."""
    def step(h, x_t):
        h_new = jnp.tanh(x_t @ w_ih.T + b_ih + h @ w_hh.T + b_hh)
        return h_new, h_new
    h_last, r = lax.scan(step, h0[0], x)
    y = r @ w_fc.T + b_fc
    return y, h_last[None, ...]


if __name__ == "__main__":
    in_d, out_d, hidden_d = 2, 2, 8
    seq, batch = 8, 2

    key = jax.random.PRNGKey(0)
    ks = jax.random.split(key, 8)
    scale = 1.0 / jnp.sqrt(hidden_d)

    # Deterministic synthetic parameters (shapes match nn.RNN / nn.Linear).
    w_ih = jax.random.uniform(ks[0], (hidden_d, in_d), jnp.float32, -scale, scale)
    w_hh = jax.random.uniform(ks[1], (hidden_d, hidden_d), jnp.float32, -scale, scale)
    b_ih = jax.random.uniform(ks[2], (hidden_d,), jnp.float32, -scale, scale)
    b_hh = jax.random.uniform(ks[3], (hidden_d,), jnp.float32, -scale, scale)
    w_fc = jax.random.uniform(ks[4], (out_d, hidden_d), jnp.float32, -scale, scale)
    b_fc = jax.random.uniform(ks[5], (out_d,), jnp.float32, -scale, scale)

    x = jax.random.normal(ks[6], (seq, batch, in_d), jnp.float32)
    h0 = jax.random.normal(ks[7], (1, batch, hidden_d), jnp.float32)

    fwd = jax.jit(rnn_model_forward)
    y, h = fwd(x, h0, w_ih, w_hh, b_ih, b_hh, w_fc, b_fc)
    jax.block_until_ready((y, h))

    y_ref, h_ref = rnn_model_reference(x, h0, w_ih, w_hh, b_ih, b_hh, w_fc, b_fc)
    assert jnp.allclose(y, y_ref, atol=1e-5), "y mismatch vs reference"
    assert jnp.allclose(h, h_ref, atol=1e-5), "h mismatch vs reference"

    print("KERNEL_OK")
</pallas_src>

<mosaic_0001>
module attributes {stable_mosaic.version = 11 : i64} {
  func.func @linear_kernel(%arg0: memref<16x8xf32, #tpu.memory_space<vmem>>, %arg1: memref<8x2xf32, #tpu.memory_space<vmem>>, %arg2: memref<1x2xf32, #tpu.memory_space<vmem>>, %arg3: memref<16x2xf32, #tpu.memory_space<vmem>>) attributes {dimension_semantics = [], scalar_prefetch = 0 : i64, scratch_operands = 0 : i64, tpu.core_type = #tpu.core_type<tc>} {
    %c0 = arith.constant 0 : index
    %c0_0 = arith.constant 0 : index
    %0 = vector.load %arg0[%c0, %c0_0] : memref<16x8xf32, #tpu.memory_space<vmem>>, vector<16x8xf32>
    %c0_1 = arith.constant 0 : index
    %c0_2 = arith.constant 0 : index
    %1 = vector.load %arg1[%c0_1, %c0_2] : memref<8x2xf32, #tpu.memory_space<vmem>>, vector<8x2xf32>
    %cst = arith.constant dense<0.000000e+00> : vector<16x2xf32>
    %2 = tpu.matmul %0, %1, %cst {dimension_numbers = #tpu.dot_dimension_numbers<[1], [0], [0], [1], [0, 0, 1, 1], [], []>} : vector<16x8xf32>, vector<8x2xf32>, vector<16x2xf32> -> vector<16x2xf32>
    %c0_3 = arith.constant 0 : index
    %c0_4 = arith.constant 0 : index
    %3 = vector.load %arg2[%c0_3, %c0_4] : memref<1x2xf32, #tpu.memory_space<vmem>>, vector<1x2xf32>
    %4 = vector.broadcast %3 : vector<1x2xf32> to vector<16x2xf32>
    %5 = arith.addf %2, %4 : vector<16x2xf32>
    %c0_5 = arith.constant 0 : index
    %c0_6 = arith.constant 0 : index
    %6 = vector.load %arg3[%c0_5, %c0_6] : memref<16x2xf32, #tpu.memory_space<vmem>>, vector<16x2xf32>
    tpu.vector_store %arg3[%c0_5, %c0_6], %5 {strides = array<i32>} : memref<16x2xf32, #tpu.memory_space<vmem>>, vector<16x2xf32>,
    return
  }
}

module attributes {stable_mosaic.version = 11 : i64} {
  func.func @rnn_recurrence_kernel(%arg0: memref<8x2x2xf32, #tpu.memory_space<vmem>>, %arg1: memref<1x2x8xf32, #tpu.memory_space<vmem>>, %arg2: memref<10x8xf32, #tpu.memory_space<vmem>>, %arg3: memref<1x8xf32, #tpu.memory_space<vmem>>, %arg4: memref<8x2x8xf32, #tpu.memory_space<vmem>>, %arg5: memref<1x2x8xf32, #tpu.memory_space<vmem>>) attributes {dimension_semantics = [], scalar_prefetch = 0 : i64, scratch_operands = 0 : i64, tpu.core_type = #tpu.core_type<tc>} {
    %c0 = arith.constant 0 : index
    %c0_0 = arith.constant 0 : index
    %c0_1 = arith.constant 0 : index
    %0 = vector.load %arg1[%c0, %c0_0, %c0_1] : memref<1x2x8xf32, #tpu.memory_space<vmem>>, vector<1x2x8xf32>
    %1 = vector.shape_cast %0 : vector<1x2x8xf32> to vector<2x8xf32>
    %c0_i32 = arith.constant 0 : i32
    %2 = arith.index_cast %c0_i32 : i32 to index
    %c0_2 = arith.constant 0 : index
    %c0_3 = arith.constant 0 : index
    %3 = vector.load %arg0[%2, %c0_2, %c0_3] : memref<8x2x2xf32, #tpu.memory_space<vmem>>, vector<1x2x2xf32>
    %4 = vector.shape_cast %3 : vector<1x2x2xf32> to vector<2x2xf32>
    %5 = tpu.concatenate %4, %1 in 1 : vector<2x2xf32>, vector<2x8xf32> -> vector<2x10xf32>
    %c0_4 = arith.constant 0 : index
    %c0_5 = arith.constant 0 : index
    %6 = vector.load %arg2[%c0_4, %c0_5] : memref<10x8xf32, #tpu.memory_space<vmem>>, vector<10x8xf32>
    %cst = arith.constant dense<0.000000e+00> : vector<2x8xf32>
    %7 = tpu.matmul %5, %6, %cst {dimension_numbers = #tpu.dot_dimension_numbers<[1], [0], [0], [1], [0, 0, 1, 1], [], []>} : vector<2x10xf32>, vector<10x8xf32>, vector<2x8xf32> -> vector<2x8xf32>
    %c0_6 = arith.constant 0 : index
    %c0_7 = arith.constant 0 : index
    %8 = vector.load %arg3[%c0_6, %c0_7] : memref<1x8xf32, #tpu.memory_space<vmem>>, vector<1x8xf32>
    %9 = vector.broadcast %8 : vector<1x8xf32> to vector<2x8xf32>
    %10 = arith.addf %7, %9 : vector<2x8xf32>
    %11 = math.tanh %10 : vector<2x8xf32>
    %12 = arith.index_cast %c0_i32 : i32 to index
    %c0_8 = arith.constant 0 : index
    %c0_9 = arith.constant 0 : index
    %13 = vector.load %arg4[%12, %c0_8, %c0_9] : memref<8x2x8xf32, #tpu.memory_space<vmem>>, vector<1x2x8xf32>
    %14 = vector.shape_cast %13 : vector<1x2x8xf32> to vector<2x8xf32>
    %15 = vector.shape_cast %11 : vector<2x8xf32> to vector<1x2x8xf32>
    tpu.vector_store %arg4[%12, %c0_8, %c0_9], %15 {strides = array<i32>} : memref<8x2x8xf32, #tpu.memory_space<vmem>>, vector<1x2x8xf32>,
    %c1_i32 = arith.constant 1 : i32
    %16 = arith.index_cast %c1_i32 : i32 to index
    %c0_10 = arith.constant 0 : index
    %c0_11 = arith.constant 0 : index
    %17 = vector.load %arg0[%16, %c0_10, %c0_11] : memref<8x2x2xf32, #tpu.memory_space<vmem>>, vector<1x2x2xf32>
    %18 = vector.shape_cast %17 : vector<1x2x2xf32> to vector<2x2xf32>
    %19 = tpu.concatenate %18, %11 in 1 : vector<2x2xf32>, vector<2x8xf32> -> vector<2x10xf32>
    %c0_12 = arith.constant 0 : index
    %c0_13 = arith.constant 0 : index
    %20 = vector.load %arg2[%c0_12, %c0_13] : memref<10x8xf32, #tpu.memory_space<vmem>>, vector<10x8xf32>
    %cst_14 = arith.constant dense<0.000000e+00> : vector<2x8xf32>
    %21 = tpu.matmul %19, %20, %cst_14 {dimension_numbers = #tpu.dot_dimension_numbers<[1], [0], [0], [1], [0, 0, 1, 1], [], []>} : vector<2x10xf32>, vector<10x8xf32>, vector<2x8xf32> -> vector<2x8xf32>
    %c0_15 = arith.constant 0 : index
    %c0_16 = arith.constant 0 : index
    %22 = vector.load %arg3[%c0_15, %c0_16] : memref<1x8xf32, #tpu.memory_space<vmem>>, vector<1x8xf32>
    %23 = vector.broadcast %22 : vector<1x8xf32> to vector<2x8xf32>
    %24 = arith.addf %21, %23 : vector<2x8xf32>
    %25 = math.tanh %24 : vector<2x8xf32>
    %26 = arith.index_cast %c1_i32 : i32 to index
    %c0_17 = arith.constant 0 : index
    %c0_18 = arith.constant 0 : index
    %27 = vector.load %arg4[%26, %c0_17, %c0_18] : memref<8x2x8xf32, #tpu.memory_space<vmem>>, vector<1x2x8xf32>
    %28 = vector.shape_cast %27 : vector<1x2x8xf32> to vector<2x8xf32>
    %29 = vector.shape_cast %25 : vector<2x8xf32> to vector<1x2x8xf32>
    tpu.vector_store %arg4[%26, %c0_17, %c0_18], %29 {strides = array<i32>} : memref<8x2x8xf32, #tpu.memory_space<vmem>>, vector<1x2x8xf32>,
    %c2_i32 = arith.constant 2 : i32
    %30 = arith.index_cast %c2_i32 : i32 to index
    %c0_19 = arith.constant 0 : index
    %c0_20 = arith.constant 0 : index
    %31 = vector.load %arg0[%30, %c0_19, %c0_20] : memref<8x2x2xf32, #tpu.memory_space<vmem>>, vector<1x2x2xf32>
    %32 = vector.shape_cast %31 : vector<1x2x2xf32> to vector<2x2xf32>
    %33 = tpu.concatenate %32, %25 in 1 : vector<2x2xf32>, vector<2x8xf32> -> vector<2x10xf32>
    %c0_21 = arith.constant 0 : index
    %c0_22 = arith.constant 0 : index
    %34 = vector.load %arg2[%c0_21, %c0_22] : memref<10x8xf32, #tpu.memory_space<vmem>>, vector<10x8xf32>
    %cst_23 = arith.constant dense<0.000000e+00> : vector<2x8xf32>
    %35 = tpu.matmul %33, %34, %cst_23 {dimension_numbers = #tpu.dot_dimension_numbers<[1], [0], [0], [1], [0, 0, 1, 1], [], []>} : vector<2x10xf32>, vector<10x8xf32>, vector<2x8xf32> -> vector<2x8xf32>
    %c0_24 = arith.constant 0 : index
    %c0_25 = arith.constant 0 : index
    %36 = vector.load %arg3[%c0_24, %c0_25] : memref<1x8xf32, #tpu.memory_space<vmem>>, vector<1x8xf32>
    %37 = vector.broadcast %36 : vector<1x8xf32> to vector<2x8xf32>
    %38 = arith.addf %35, %37 : vector<2x8xf32>
    %39 = math.tanh %38 : vector<2x8xf32>
    %40 = arith.index_cast %c2_i32 : i32 to index
    %c0_26 = arith.constant 0 : index
    %c0_27 = arith.constant 0 : index
    %41 = vector.load %arg4[%40, %c0_26, %c0_27] : memref<8x2x8xf32, #tpu.memory_space<vmem>>, vector<1x2x8xf32>
    %42 = vector.shape_cast %41 : vector<1x2x8xf32> to vector<2x8xf32>
    %43 = vector.shape_cast %39 : vector<2x8xf32> to vector<1x2x8xf32>
    tpu.vector_store %arg4[%40, %c0_26, %c0_27], %43 {strides = array<i32>} : memref<8x2x8xf32, #tpu.memory_space<vmem>>, vector<1x2x8xf32>,
    %c3_i32 = arith.constant 3 : i32
    %44 = arith.index_cast %c3_i32 : i32 to index
    %c0_28 = arith.constant 0 : index
    %c0_29 = arith.constant 0 : index
    %45 = vector.load %arg0[%44, %c0_28, %c0_29] : memref<8x2x2xf32, #tpu.memory_space<vmem>>, vector<1x2x2xf32>
    %46 = vector.shape_cast %45 : vector<1x2x2xf32> to vector<2x2xf32>
    %47 = tpu.concatenate %46, %39 in 1 : vector<2x2xf32>, vector<2x8xf32> -> vector<2x10xf32>
    %c0_30 = arith.constant 0 : index
    %c0_31 = arith.constant 0 : index
    %48 = vector.load %arg2[%c0_30, %c0_31] : memref<10x8xf32, #tpu.memory_space<vmem>>, vector<10x8xf32>
    %cst_32 = arith.constant dense<0.000000e+00> : vector<2x8xf32>
    %49 = tpu.matmul %47, %48, %cst_32 {dimension_numbers = #tpu.dot_dimension_numbers<[1], [0], [0], [1], [0, 0, 1, 1], [], []>} : vector<2x10xf32>, vector<10x8xf32>, vector<2x8xf32> -> vector<2x8xf32>
    %c0_33 = arith.constant 0 : index
    %c0_34 = arith.constant 0 : index
    %50 = vector.load %arg3[%c0_33, %c0_34] : memref<1x8xf32, #tpu.memory_space<vmem>>, vector<1x8xf32>
    %51 = vector.broadcast %50 : vector<1x8xf32> to vector<2x8xf32>
    %52 = arith.addf %49, %51 : vector<2x8xf32>
    %53 = math.tanh %52 : vector<2x8xf32>
    %54 = arith.index_cast %c3_i32 : i32 to index
    %c0_35 = arith.constant 0 : index
    %c0_36 = arith.constant 0 : index
    %55 = vector.load %arg4[%54, %c0_35, %c0_36] : memref<8x2x8xf32, #tpu.memory_space<vmem>>, vector<1x2x8xf32>
    %56 = vector.shape_cast %55 : vector<1x2x8xf32> to vector<2x8xf32>
    %57 = vector.shape_cast %53 : vector<2x8xf32> to vector<1x2x8xf32>
    tpu.vector_store %arg4[%54, %c0_35, %c0_36], %57 {strides = array<i32>} : memref<8x2x8xf32, #tpu.memory_space<vmem>>, vector<1x2x8xf32>,
    %c4_i32 = arith.constant 4 : i32
    %58 = arith.index_cast %c4_i32 : i32 to index
    %c0_37 = arith.constant 0 : index
    %c0_38 = arith.constant 0 : index
    %59 = vector.load %arg0[%58, %c0_37, %c0_38] : memref<8x2x2xf32, #tpu.memory_space<vmem>>, vector<1x2x2xf32>
    %60 = vector.shape_cast %59 : vector<1x2x2xf32> to vector<2x2xf32>
    %61 = tpu.concatenate %60, %53 in 1 : vector<2x2xf32>, vector<2x8xf32> -> vector<2x10xf32>
    %c0_39 = arith.constant 0 : index
    %c0_40 = arith.constant 0 : index
    %62 = vector.load %arg2[%c0_39, %c0_40] : memref<10x8xf32, #tpu.memory_space<vmem>>, vector<10x8xf32>
    %cst_41 = arith.constant dense<0.000000e+00> : vector<2x8xf32>
    %63 = tpu.matmul %61, %62, %cst_41 {dimension_numbers = #tpu.dot_dimension_numbers<[1], [0], [0], [1], [0, 0, 1, 1], [], []>} : vector<2x10xf32>, vector<10x8xf32>, vector<2x8xf32> -> vector<2x8xf32>
    %c0_42 = arith.constant 0 : index
    %c0_43 = arith.constant 0 : index
    %64 = vector.load %arg3[%c0_42, %c0_43] : memref<1x8xf32, #tpu.memory_space<vmem>>, vector<1x8xf32>
    %65 = vector.broadcast %64 : vector<1x8xf32> to vector<2x8xf32>
    %66 = arith.addf %63, %65 : vector<2x8xf32>
    %67 = math.tanh %66 : vector<2x8xf32>
    %68 = arith.index_cast %c4_i32 : i32 to index
    %c0_44 = arith.constant 0 : index
    %c0_45 = arith.constant 0 : index
    %69 = vector.load %arg4[%68, %c0_44, %c0_45] : memref<8x2x8xf32, #tpu.memory_space<vmem>>, vector<1x2x8xf32>
    %70 = vector.shape_cast %69 : vector<1x2x8xf32> to vector<2x8xf32>
    %71 = vector.shape_cast %67 : vector<2x8xf32> to vector<1x2x8xf32>
    tpu.vector_store %arg4[%68, %c0_44, %c0_45], %71 {strides = array<i32>} : memref<8x2x8xf32, #tpu.memory_space<vmem>>, vector<1x2x8xf32>,
    %c5_i32 = arith.constant 5 : i32
    %72 = arith.index_cast %c5_i32 : i32 to index
    %c0_46 = arith.constant 0 : index
    %c0_47 = arith.constant 0 : index
    %73 = vector.load %arg0[%72, %c0_46, %c0_47] : memref<8x2x2xf32, #tpu.memory_space<vmem>>, vector<1x2x2xf32>
    %74 = vector.shape_cast %73 : vector<1x2x2xf32> to vector<2x2xf32>
    %75 = tpu.concatenate %74, %67 in 1 : vector<2x2xf32>, vector<2x8xf32> -> vector<2x10xf32>
    %c0_48 = arith.constant 0 : index
    %c0_49 = arith.constant 0 : index
    %76 = vector.load %arg2[%c0_48, %c0_49] : memref<10x8xf32, #tpu.memory_space<vmem>>, vector<10x8xf32>
    %cst_50 = arith.constant dense<0.000000e+00> : vector<2x8xf32>
    %77 = tpu.matmul %75, %76, %cst_50 {dimension_numbers = #tpu.dot_dimension_numbers<[1], [0], [0], [1], [0, 0, 1, 1], [], []>} : vector<2x10xf32>, vector<10x8xf32>, vector<2x8xf32> -> vector<2x8xf32>
    %c0_51 = arith.constant 0 : index
    %c0_52 = arith.constant 0 : index
    %78 = vector.load %arg3[%c0_51, %c0_52] : memref<1x8xf32, #tpu.memory_space<vmem>>, vector<1x8xf32>
    %79 = vector.broadcast %78 : vector<1x8xf32> to vector<2x8xf32>
    %80 = arith.addf %77, %79 : vector<2x8xf32>
    %81 = math.tanh %80 : vector<2x8xf32>
    %82 = arith.index_cast %c5_i32 : i32 to index
    %c0_53 = arith.constant 0 : index
    %c0_54 = arith.constant 0 : index
    %83 = vector.load %arg4[%82, %c0_53, %c0_54] : memref<8x2x8xf32, #tpu.memory_space<vmem>>, vector<1x2x8xf32>
    %84 = vector.shape_cast %83 : vector<1x2x8xf32> to vector<2x8xf32>
    %85 = vector.shape_cast %81 : vector<2x8xf32> to vector<1x2x8xf32>
    tpu.vector_store %arg4[%82, %c0_53, %c0_54], %85 {strides = array<i32>} : memref<8x2x8xf32, #tpu.memory_space<vmem>>, vector<1x2x8xf32>,
    %c6_i32 = arith.constant 6 : i32
    %86 = arith.index_cast %c6_i32 : i32 to index
    %c0_55 = arith.constant 0 : index
    %c0_56 = arith.constant 0 : index
    %87 = vector.load %arg0[%86, %c0_55, %c0_56] : memref<8x2x2xf32, #tpu.memory_space<vmem>>, vector<1x2x2xf32>
    %88 = vector.shape_cast %87 : vector<1x2x2xf32> to vector<2x2xf32>
    %89 = tpu.concatenate %88, %81 in 1 : vector<2x2xf32>, vector<2x8xf32> -> vector<2x10xf32>
    %c0_57 = arith.constant 0 : index
    %c0_58 = arith.constant 0 : index
    %90 = vector.load %arg2[%c0_57, %c0_58] : memref<10x8xf32, #tpu.memory_space<vmem>>, vector<10x8xf32>
    %cst_59 = arith.constant dense<0.000000e+00> : vector<2x8xf32>
    %91 = tpu.matmul %89, %90, %cst_59 {dimension_numbers = #tpu.dot_dimension_numbers<[1], [0], [0], [1], [0, 0, 1, 1], [], []>} : vector<2x10xf32>, vector<10x8xf32>, vector<2x8xf32> -> vector<2x8xf32>
    %c0_60 = arith.constant 0 : index
    %c0_61 = arith.constant 0 : index
    %92 = vector.load %arg3[%c0_60, %c0_61] : memref<1x8xf32, #tpu.memory_space<vmem>>, vector<1x8xf32>
    %93 = vector.broadcast %92 : vector<1x8xf32> to vector<2x8xf32>
    %94 = arith.addf %91, %93 : vector<2x8xf32>
    %95 = math.tanh %94 : vector<2x8xf32>
    %96 = arith.index_cast %c6_i32 : i32 to index
    %c0_62 = arith.constant 0 : index
    %c0_63 = arith.constant 0 : index
    %97 = vector.load %arg4[%96, %c0_62, %c0_63] : memref<8x2x8xf32, #tpu.memory_space<vmem>>, vector<1x2x8xf32>
    %98 = vector.shape_cast %97 : vector<1x2x8xf32> to vector<2x8xf32>
    %99 = vector.shape_cast %95 : vector<2x8xf32> to vector<1x2x8xf32>
    tpu.vector_store %arg4[%96, %c0_62, %c0_63], %99 {strides = array<i32>} : memref<8x2x8xf32, #tpu.memory_space<vmem>>, vector<1x2x8xf32>,
    %c7_i32 = arith.constant 7 : i32
    %100 = arith.index_cast %c7_i32 : i32 to index
    %c0_64 = arith.constant 0 : index
    %c0_65 = arith.constant 0 : index
    %101 = vector.load %arg0[%100, %c0_64, %c0_65] : memref<8x2x2xf32, #tpu.memory_space<vmem>>, vector<1x2x2xf32>
    %102 = vector.shape_cast %101 : vector<1x2x2xf32> to vector<2x2xf32>
    %103 = tpu.concatenate %102, %95 in 1 : vector<2x2xf32>, vector<2x8xf32> -> vector<2x10xf32>
    %c0_66 = arith.constant 0 : index
    %c0_67 = arith.constant 0 : index
    %104 = vector.load %arg2[%c0_66, %c0_67] : memref<10x8xf32, #tpu.memory_space<vmem>>, vector<10x8xf32>
    %cst_68 = arith.constant dense<0.000000e+00> : vector<2x8xf32>
    %105 = tpu.matmul %103, %104, %cst_68 {dimension_numbers = #tpu.dot_dimension_numbers<[1], [0], [0], [1], [0, 0, 1, 1], [], []>} : vector<2x10xf32>, vector<10x8xf32>, vector<2x8xf32> -> vector<2x8xf32>
    %c0_69 = arith.constant 0 : index
    %c0_70 = arith.constant 0 : index
    %106 = vector.load %arg3[%c0_69, %c0_70] : memref<1x8xf32, #tpu.memory_space<vmem>>, vector<1x8xf32>
    %107 = vector.broadcast %106 : vector<1x8xf32> to vector<2x8xf32>
    %108 = arith.addf %105, %107 : vector<2x8xf32>
    %109 = math.tanh %108 : vector<2x8xf32>
    %110 = arith.index_cast %c7_i32 : i32 to index
    %c0_71 = arith.constant 0 : index
    %c0_72 = arith.constant 0 : index
    %111 = vector.load %arg4[%110, %c0_71, %c0_72] : memref<8x2x8xf32, #tpu.memory_space<vmem>>, vector<1x2x8xf32>
    %112 = vector.shape_cast %111 : vector<1x2x8xf32> to vector<2x8xf32>
    %113 = vector.shape_cast %109 : vector<2x8xf32> to vector<1x2x8xf32>
    tpu.vector_store %arg4[%110, %c0_71, %c0_72], %113 {strides = array<i32>} : memref<8x2x8xf32, #tpu.memory_space<vmem>>, vector<1x2x8xf32>,
    %c8_i32 = arith.constant 8 : i32
    %c0_73 = arith.constant 0 : index
    %c0_74 = arith.constant 0 : index
    %c0_75 = arith.constant 0 : index
    %114 = vector.load %arg5[%c0_73, %c0_74, %c0_75] : memref<1x2x8xf32, #tpu.memory_space<vmem>>, vector<1x2x8xf32>
    %115 = vector.shape_cast %114 : vector<1x2x8xf32> to vector<2x8xf32>
    %116 = vector.shape_cast %109 : vector<2x8xf32> to vector<1x2x8xf32>
    tpu.vector_store %arg5[%c0_73, %c0_74, %c0_75], %116 {strides = array<i32>} : memref<1x2x8xf32, #tpu.memory_space<vmem>>, vector<1x2x8xf32>,
    return
  }
}

</mosaic_0001>

<bundles_post_ra>
// kernel: rnn_model_forward.3
= control target key start
LH: loop header
LB: loop body
LE: loop exit
PB: predicated region body
PF: predicated region fallthrough
CT: control target
= control target key end

     0   :  { %vm24_vm0 = vcmask 64512   ;;  %vm106_vm1 = vcmask 15360   ;;  %s162_s1 = inlined_call_operand.vmem [shape: f32[8,2], index: 1, kind: input, shape index: {}]   ;;  %s163_s0 = inlined_call_operand.vmem [shape: f32[16,8], index: 0, kind: input, shape index: {}]   ;;  %s164_s2 = inlined_call_operand.vmem [shape: f32[1,2], index: 2, kind: input, shape index: {}]   ;;  %s165_s3 = inlined_call_operand.vmem [shape: f32[16,2], index: 3, kind: output, shape index: {}]  }
   0x1   :  { %v16_v0 = vld [vmem:[%s162_s1] sm:$0xff]  ;;  %v15_v2 = vld [vmem:[%s163_s0 + $0x8] sm:$0xff] }
   0x2   :  { %v14_v1 = vld [vmem:[%s163_s0] sm:$0xff]  ;;  %119 = vmatprep.subr.mxu0 %v16_v0 }
   0x3   :  { %121 = vmatprep.mubr.msk.f32.mxu0 %vm24_vm0, %v14_v1  ;;  %120 = vmatpush3.msra.mxu0 %v16_v0  ;;  %v113_v3 = vld [vmem:[%s164_s2] ss:$0 sm:$0xff] }
   0x4   :  { %122 = vmatmul.mubr.msk.f32.vlgmr.msra.gmra.mrb[0].mxu0 %vm24_vm0, %v15_v2 }
  0xd7   :  { %v123_v4 = vpop.f32.mrb[0].mxu0 }
  0xd8   :  { %v103_v5 = vadd.f32 %v123_v4, %v113_v3  ;;  %v97_v6 = vpop.f32.mrb[1].mxu0 }
  0xd9   :  { %v98_v7 = vadd.f32 %v113_v3, %v97_v6 }
  0xda   :  { %108 = vst.msk [vmem:[%s165_s3 + $0x8] sm:$0xff] %vm106_vm1, %v103_v5 }
  0xdb   :  { %107 = vst.msk [vmem:[%s165_s3] sm:$0xff] %vm106_vm1, %v98_v7 }

// kernel: rnn_model_forward.2
= control target key start
LH: loop header
LB: loop body
LE: loop exit
PB: predicated region body
PF: predicated region fallthrough
CT: control target
= control target key end

     0   :  { %vm41_vm0 = vcmask 1041408   ;;  %s998_s22 = smov 2   ;;  %v999_v2 = vmov 0.0|0.0   ;;  %vm1000_vm1 = vmmov 1   ;;  %vm1001_vm3 = vmmov 0   ;;  %s1224_s0 = inlined_call_operand.vmem [shape: f32[8,2,2], index: 0, kind: input, shape index: {}]   ;;  %s1225_s1 = inlined_call_operand.vmem [shape: f32[1,2,8], index: 1, kind: input, shape index: {}]   ;;  %s1226_s2 = inlined_call_operand.vmem [shape: f32[10,8], index: 2, kind: input, shape index: {}]   ;;  %s1227_s3 = inlined_call_operand.vmem [shape: f32[1,8], index: 3, kind: input, shape index: {}]   ;;  %s1228_s4 = inlined_call_operand.vmem [shape: f32[8,2,8], index: 4, kind: output, shape index: {0}]   ;;  %s1229_s5 = inlined_call_operand.hbm [shape: f32[1,2,8], index: 5, kind: output, shape index: {1}]  }
   0x1   :  { %v20_v0 = vld [vmem:[%s1225_s1] sm:$0x3]  ;;  %920 = vmatprep.subr.bf16.mxu0 %v999_v2  ;;  %v29_v3 = vld [vmem:[%s1226_s2 + $0x8] sm:$0x3]  ;;  %vm1048_vm2 = vmpackc.low %vm41_vm0, %vm1000_vm1  ;;  %924 = vmatprep.subr.bf16.mxu1 %v999_v2  ;;  %v1002_v6 = vmov 0.0  }
   0x2   :  { %v1040_v1 = vld [vmem:[%s1226_s2] sm:$0xff]  ;;  %23 = vrot.lane.b32.xlu0 %v20_v0, %s998_s22  ;;  %868 = vmatprep.mubr.msk.f32.mxu0 %vm1001_vm3, %v1002_v6 }
   0x3   :  { %v921_v4 = vpack.c.bf16 %v29_v3, %v1040_v1  ;;  %875 = vmatprep.mubr.msk.f32.mxu1 %vm1001_vm3, %v1002_v6 }
   0x4   :  { %11 = vsyncpa [#allocation3], 0  ;;  %v21_v7 = vld [vmem:[%s1224_s0] sm:$0x3]  ;;  %vm26_vm4 = vcmask 15360   ;;  %vm37_vm5 = vcmask 80896  }
   0x5   :  { %923 = vmatpush3.bf16.msk.msra.mxu0 %vm1048_vm2, %v921_v4  ;;  %v126_v10 = vld [vmem:[%s1226_s2 + $0x8] sm:$0x3]  ;;  %v1077_v12 = vld [vmem:[%s1227_s3] ss:$0 sm:$0xff]  ;;  %vm116_vm6 = vcmask 58368   ;;  %s1003_s17 = smov [#allocation2]  }
   0x6   :  { %928 = vmatprep.subr.bf16.mxu0 %v999_v2  ;;  %v925_v11 = vpack.c.bf16 %v126_v10, %v1040_v1  ;;  %v805_v17 = vld [vmem:[%s1224_s0 + $0x2] sm:$0x3]  ;;  %v221_v20 = vld [vmem:[%s1226_s2 + $0x8] sm:$0x3]  ;;  %v810_v26 = vld [vmem:[%s1224_s0 + $0x4] sm:$0x3] }
   0x7   :  { %v929_v21 = vpack.c.bf16 %v221_v20, %v1040_v1  ;;  %v316_v29 = vld [vmem:[%s1226_s2 + $0x8] sm:$0x3]  ;;  %v815_v35 = vld [vmem:[%s1224_s0 + $0x6] sm:$0x3]  ;;  %v825_v53 = vld [vmem:[%s1224_s0 + $0xa] sm:$0x3] }
   0x8   :  { %927 = vmatpush3.bf16.msk.msra.mxu1 %vm1048_vm2, %v925_v11  ;;  %v933_v30 = vpack.c.bf16 %v316_v29, %v1040_v1  ;;  %v411_v38 = vld [vmem:[%s1226_s2 + $0x8] sm:$0x3]  ;;  %v830_v62 = vld [vmem:[%s1224_s0 + $0xc] sm:$0x3]  ;;  %s792_s18 = sshll.u32 %s1003_s17, 4  ;;  %s793_s18 = int_to_ptr.vmem [resolvable:$true] %s792_s18 }
   0x9   :  { %932 = vmatprep.subr.bf16.mxu1 %v999_v2  ;;  %v937_v39 = vpack.c.bf16 %v411_v38, %v1040_v1  ;;  %v820_v44 = vld [vmem:[%s1224_s0 + $0x8] sm:$0x3]  ;;  %p979_p1 = scmp.lt.s32.totalorder %s793_s18, %s793_s18 }
   0xa   :  { %v506_v47 = vld [vmem:[%s1226_s2 + $0x8] sm:$0x3] }
   0xb   :  { %v941_v48 = vpack.c.bf16 %v506_v47, %v1040_v1  ;;  %v601_v56 = vld [vmem:[%s1226_s2 + $0x8] sm:$0x3] }
   0xc   :  { %v945_v57 = vpack.c.bf16 %v601_v56, %v1040_v1 }
  0x74   :  { %v24_v8 = vpop.permute.xlu0 %23 }
  0x75   :  { %v27_v9 = vsel %vm26_vm4, %v21_v7, %v24_v8 }
  0x76   :  { %869 = vmatmul.mubr.msk.f32.vlgmr.msra.gmra.mrb[0].mxu0 %vm37_vm5, %v27_v9 }
  0x77   :  { %882 = vmatprep.mubr.msk.f32.mxu0 %vm1001_vm3, %v1002_v6  ;;  %931 = vmatpush3.bf16.msk.msra.mxu0 %vm1048_vm2, %v929_v21 }
  0x78   :  { %936 = vmatprep.subr.bf16.mxu0 %v999_v2 }
 0x149   :  { %v111_v13 = vpop.f32.mrb[0].mxu0 }
 0x14a   :  { %v112_v14 = vadd.f32 %v1077_v12, %v111_v13  ;;  %v870_v15 = vpop.f32.mrb[1].mxu0 }
 0x14c   :  { %958 = vtanh.f32 %v112_v14 }
 0x156   :  { %v959_v16 = vpop.eup %958 }
 0x157   :  { %117 = vst.msk [vmem:[%s1228_s4] sm:$0x3] %vm116_vm6, %v959_v16  ;;  %121 = vrot.lane.b32.xlu0 %v959_v16, %s998_s22 }
 0x1c9   :  { %v122_v18 = vpop.permute.xlu0 %121 }
 0x1ca   :  { %v124_v19 = vsel %vm26_vm4, %v805_v17, %v122_v18 }
 0x1cb   :  { %876 = vmatmul.mubr.msk.f32.vlgmr.msra.gmra.mrb[0].mxu1 %vm37_vm5, %v124_v19 }
 0x1cc   :  { %889 = vmatprep.mubr.msk.f32.mxu1 %vm1001_vm3, %v1002_v6  ;;  %935 = vmatpush3.bf16.msk.msra.mxu1 %vm1048_vm2, %v933_v30 }
 0x1cd   :  { %940 = vmatprep.subr.bf16.mxu1 %v999_v2 }
 0x29e   :  { %v206_v22 = vpop.f32.mrb[0].mxu1 }
 0x29f   :  { %v207_v23 = vadd.f32 %v1077_v12, %v206_v22  ;;  %v877_v24 = vpop.f32.mrb[1].mxu1 }
 0x2a1   :  { %960 = vtanh.f32 %v207_v23 }
 0x2ab   :  { %v961_v25 = vpop.eup %960 }
 0x2ac   :  { %809 = vst.msk [vmem:[%s1228_s4 + $0x2] sm:$0x3] %vm116_vm6, %v961_v25  ;;  %216 = vrot.lane.b32.xlu1 %v961_v25, %s998_s22 }
 0x31e   :  { %v217_v27 = vpop.permute.xlu1 %216 }
 0x31f   :  { %v219_v28 = vsel %vm26_vm4, %v810_v26, %v217_v27 }
 0x320   :  { %883 = vmatmul.mubr.msk.f32.vlgmr.msra.gmra.mrb[2].mxu0 %vm37_vm5, %v219_v28 }
 0x321   :  { %896 = vmatprep.mubr.msk.f32.mxu0 %vm1001_vm3, %v1002_v6  ;;  %939 = vmatpush3.bf16.msk.msra.mxu0 %vm1048_vm2, %v937_v39 }
 0x322   :  { %944 = vmatprep.subr.bf16.mxu0 %v999_v2 }
 0x3f3   :  { %v301_v31 = vpop.f32.mrb[2].mxu0 }
 0x3f4   :  { %v302_v32 = vadd.f32 %v1077_v12, %v301_v31  ;;  %v884_v33 = vpop.f32.mrb[3].mxu0 }
 0x3f6   :  { %962 = vtanh.f32 %v302_v32 }
 0x400   :  { %v963_v34 = vpop.eup %962 }
 0x401   :  { %814 = vst.msk [vmem:[%s1228_s4 + $0x4] sm:$0x3] %vm116_vm6, %v963_v34  ;;  %311 = vrot.lane.b32.xlu1 %v963_v34, %s998_s22 }
 0x473   :  { %v312_v36 = vpop.permute.xlu1 %311 }
 0x474   :  { %v314_v37 = vsel %vm26_vm4, %v815_v35, %v312_v36 }
 0x475   :  { %890 = vmatmul.mubr.msk.f32.vlgmr.msra.gmra.mrb[2].mxu1 %vm37_vm5, %v314_v37 }
 0x476   :  { %903 = vmatprep.mubr.msk.f32.mxu1 %vm1001_vm3, %v1002_v6  ;;  %943 = vmatpush3.bf16.msk.msra.mxu1 %vm1048_vm2, %v941_v48 }
 0x477   :  { %948 = vmatprep.subr.bf16.mxu1 %v999_v2  ;;  %v696_v2 = vld [vmem:[%s1226_s2 + $0x8] sm:$0x3] }
 0x478   :  { %v949_v3 = vpack.c.bf16 %v696_v2, %v1040_v1  ;;  %v835_v1 = vld [vmem:[%s1224_s0 + $0xe] sm:$0x3]  ;;  %s974_s0 = scalar_lea.vmem %s793_s18, 32 }
 0x479   :  { %p975_p0 = scmp.ne.s32.totalorder %s793_s18, %s974_s0  ;;  %p980_p2 = scmp.lt.s32.totalorder %s974_s0, %s974_s0 }
 0x47b   :  { %p981_p3 = por %p980_p2, %p979_p1 }
 0x47d   :  { %p982_p4 = pnand %p981_p3, %p975_p0 }
 0x548   :  { %v396_v40 = vpop.f32.mrb[2].mxu1 }
 0x549   :  { %v397_v41 = vadd.f32 %v1077_v12, %v396_v40  ;;  %v891_v42 = vpop.f32.mrb[3].mxu1 }
 0x54b   :  { %964 = vtanh.f32 %v397_v41 }
 0x555   :  { %v965_v43 = vpop.eup %964 }
 0x556   :  { %819 = vst.msk [vmem:[%s1228_s4 + $0x6] sm:$0x3] %vm116_vm6, %v965_v43  ;;  %406 = vrot.lane.b32.xlu0 %v965_v43, %s998_s22 }
 0x5c8   :  { %v407_v45 = vpop.permute.xlu0 %406 }
 0x5c9   :  { %v409_v46 = vsel %vm26_vm4, %v820_v44, %v407_v45 }
 0x5ca   :  { %897 = vmatmul.mubr.msk.f32.vlgmr.msra.gmra.mrb[4].mxu0 %vm37_vm5, %v409_v46 }
 0x5cb   :  { %910 = vmatprep.mubr.msk.f32.mxu0 %vm1001_vm3, %v1002_v6  ;;  %947 = vmatpush3.bf16.msk.msra.mxu0 %vm1048_vm2, %v945_v57 }
 0x69d   :  { %v491_v49 = vpop.f32.mrb[4].mxu0 }
 0x69e   :  { %v492_v50 = vadd.f32 %v1077_v12, %v491_v49  ;;  %v898_v51 = vpop.f32.mrb[5].mxu0 }
 0x6a0   :  { %966 = vtanh.f32 %v492_v50 }
 0x6aa   :  { %v967_v52 = vpop.eup %966 }
 0x6ab   :  { %824 = vst.msk [vmem:[%s1228_s4 + $0x8] sm:$0x3] %vm116_vm6, %v967_v52  ;;  %501 = vrot.lane.b32.xlu1 %v967_v52, %s998_s22 }
 0x71d   :  { %v502_v54 = vpop.permute.xlu1 %501 }
 0x71e   :  { %v504_v55 = vsel %vm26_vm4, %v825_v53, %v502_v54 }
 0x71f   :  { %904 = vmatmul.mubr.msk.f32.vlgmr.msra.gmra.mrb[4].mxu1 %vm37_vm5, %v504_v55 }
 0x720   :  { %917 = vmatprep.mubr.msk.f32.mxu1 %vm1001_vm3, %v1002_v6  ;;  %951 = vmatpush3.bf16.msk.msra.mxu1 %vm1048_vm2, %v949_v3 }
 0x7f2   :  { %v586_v58 = vpop.f32.mrb[4].mxu1 }
 0x7f3   :  { %v587_v59 = vadd.f32 %v1077_v12, %v586_v58  ;;  %v905_v60 = vpop.f32.mrb[5].mxu1 }
 0x7f5   :  { %968 = vtanh.f32 %v587_v59 }
 0x7ff   :  { %v969_v61 = vpop.eup %968 }
 0x800   :  { %829 = vst.msk [vmem:[%s1228_s4 + $0xa] sm:$0x3] %vm116_vm6, %v969_v61  ;;  %596 = vrot.lane.b32.xlu0 %v969_v61, %s998_s22 }
 0x872   :  { %v597_v63 = vpop.permute.xlu0 %596 }
 0x873   :  { %v599_v0 = vsel %vm26_vm4, %v830_v62, %v597_v63 }
 0x874   :  { %911 = vmatmul.mubr.msk.f32.vlgmr.msra.gmra.mrb[6].mxu0 %vm37_vm5, %v599_v0 }
 0x947   :  { %v681_v4 = vpop.f32.mrb[6].mxu0 }
 0x948   :  { %v682_v6 = vadd.f32 %v1077_v12, %v681_v4  ;;  %v912_v7 = vpop.f32.mrb[7].mxu0 }
 0x94a   :  { %970 = vtanh.f32 %v682_v6 }
 0x954   :  { %v971_v8 = vpop.eup %970 }
 0x955   :  { %834 = vst.msk [vmem:[%s1228_s4 + $0xc] sm:$0x3] %vm116_vm6, %v971_v8  ;;  %691 = vrot.lane.b32.xlu1 %v971_v8, %s998_s22 }
 0x9c7   :  { %v692_v9 = vpop.permute.xlu1 %691 }
 0x9c8   :  { %v694_v5 = vsel %vm26_vm4, %v835_v1, %v692_v9 }
 0x9c9   :  { %918 = vmatmul.mubr.msk.f32.vlgmr.msra.gmra.mrb[6].mxu1 %vm37_vm5, %v694_v5 }
 0xa9c   :  { %v776_v10 = vpop.f32.mrb[6].mxu1 }
 0xa9d   :  { %v777_v11 = vadd.f32 %v1077_v12, %v776_v10  ;;  %v919_v13 = vpop.f32.mrb[7].mxu1 }
 0xa9f   :  { %972 = vtanh.f32 %v777_v11 }
 0xaa9   :  { %v973_v14 = vpop.eup %972 }
 0xaaa   :  { %839 = vst.msk [vmem:[%s1228_s4 + $0xe] sm:$0x3] %vm116_vm6, %v973_v14  ;;  %783 = vst.msk [vmem:[#allocation2] sm:$0x3] %vm116_vm6, %v973_v14 }
 0xaab   :  { %985 = shalt.err (!%p982_p4)
}
 0xaac   :  { %s986_s23 = scalar_lea.hbm %s1229_s5, 32 }
 0xaad   :  { %p987_p5 = scmp.ne.s32.totalorder %s1229_s5, %s986_s23  ;;  %p990_p6 = scmp.lt.u32.totalorder %s986_s23, %s1229_s5 }
 0xaaf   :  { %p992_p7 = pnand %p990_p6, %p987_p5 }
 0xab1   :  { %995 = shalt.err (!%p992_p7)
}
 0xab2   :  { %795 = dma.vmem_to_hbm [thread:$0]  %s793_s18, 32, %s1229_s5, [#allocation3]  }
 0xab3   :  { %996 = dma.done.wait [#allocation3], 32  }
 0xab4   :  { %997 = vsyncadd [#allocation3], 4294967264 }
 0xab5   :  { %801 = vsyncpa [#allocation3], 1 }

</bundles_post_ra>
